<compile_context>
chip_gen: v7x
topology: tpu7x:2x2x1
jax: 0.10.0
libtpu: 0.0.40
codegen_flags: <defaults>
</compile_context>

<pallas_src>
import functools

import jax
import jax.numpy as jnp
from jax import lax
from jax.experimental import pallas as pl
from jax.experimental.pallas import tpu as pltpu


def _round_up(x, m):
    return (x + m - 1) // m * m


# ----------------------------- Pallas kernel --------------------------------
def _embeddings_kernel(ids_ref,                                   # SMEM (n_pad,) int32
                       tt_ref, w_ref, b_ref, g_ref, beta_ref,      # VMEM tiles
                       emb_hbm,                                    # HBM (V, H_pad) table
                       o_ref,                                      # VMEM (TM, H_pad) out
                       we_buf, dma_sem,                            # scratch (2 slots)
                       *, eps: float, tile_rows: int, hidden: int):
    i = pl.program_id(0)
    n_steps = pl.num_programs(0)
    slot = lax.rem(i, 2)

    # Issue one row DMA per row of a tile (HBM table -> VMEM slot).
    def issue_tile(tile_idx, slot_idx):
        base = tile_idx * tile_rows
        off = slot_idx * tile_rows

        def _issue(r, carry):
            row = ids_ref[base + r]
            pltpu.make_async_copy(emb_hbm.at[pl.ds(row, 1), :],
                                  we_buf.at[pl.ds(off + r, 1), :],
                                  dma_sem.at[slot_idx]).start()
            return carry

        lax.fori_loop(0, tile_rows, _issue, 0)

    # 1) Prime the pipeline: the very first step fetches its own rows.
    @pl.when(i == 0)
    def _():
        issue_tile(0, 0)

    # 2) Prefetch the NEXT tile's rows into the other slot; these DMAs complete
    #    while this step computes / writes back and the next step does its
    #    token-type FMAs, hiding the gather latency.
    @pl.when(i + 1 < n_steps)
    def _():
        issue_tile(i + 1, 1 - slot)

    # 3) Token-type "embedding": K=3 contraction as 3 VPU broadcast FMAs (no MXU),
    #    overlapped with the in-flight gather DMAs.
    tt = tt_ref[...].astype(jnp.float32)
    tt_emb = (tt[:, 0:1] * w_ref[0:1, :]
              + tt[:, 1:2] * w_ref[1:2, :]
              + tt[:, 2:3] * w_ref[2:3, :]
              + b_ref[...])

    # 4) Wait for all rows of the CURRENT slot (same-size descriptors so the
    #    semaphore byte counts match the copies issued for this slot).
    def _wait(r, carry):
        pltpu.make_async_copy(emb_hbm.at[pl.ds(0, 1), :],
                              we_buf.at[pl.ds(slot * tile_rows + r, 1), :],
                              dma_sem.at[slot]).wait()
        return carry

    lax.fori_loop(0, tile_rows, _wait, 0)

    row0 = pl.multiple_of(slot * tile_rows, 8)
    x = we_buf[pl.ds(row0, tile_rows), :] + tt_emb

    # 5) LayerNorm, one-pass variance. Padded lanes are exact zeros (table, W, b,
    #    gamma, beta all zero-padded), so sums divided by the TRUE hidden size are
    #    correct and padded output lanes come out as 0 (sliced off in the wrapper).
    inv_h = jnp.float32(1.0 / hidden)
    mean = jnp.sum(x, axis=-1, keepdims=True) * inv_h
    ex2 = jnp.sum(x * x, axis=-1, keepdims=True) * inv_h
    var = ex2 - mean * mean
    y = (x - mean) * lax.rsqrt(var + eps)
    o_ref[...] = (y * g_ref[...] + beta_ref[...]).astype(o_ref.dtype)
    # Dropout is identity at inference time.
    # TODO(synk): training-mode dropout (pltpu.prng_random_bits mask) not wired in.


# ------------------------------ JAX wrapper ----------------------------------
def longformer_quake_embeddings(input_ids, token_type_ids, params, *, eps=1e-5,
                                out_dtype=jnp.float32,
                                vmem_budget_bytes=18 << 20,
                                max_tile_rows=1024):
    """input_ids: int32 [B, S]; token_type_ids: float [B, S, 3]."""
    B, S = input_ids.shape
    emb = params["word_embeddings"].astype(jnp.float32)
    V, H = emb.shape
    N = B * S
    H_pad = _round_up(H, 128)                     # lane-dense hidden dim

    # Biggest row tile that fits the VMEM pipeline budget:
    #   we_buf (2 slots) + output (2x, double-buffered) + token_type tile (2x, lane-padded)
    per_row_bytes = 4 * (2 * H_pad + 2 * H_pad + 2 * 128)
    tile = max(8, min(max_tile_rows,
                      (vmem_budget_bytes // per_row_bytes) // 8 * 8))
    tile = min(tile, _round_up(N, 8))
    n_pad = _round_up(N, tile)
    grid = (n_pad // tile,)

    # Zero-pad params along hidden to H_pad (zeros are LN-transparent, see kernel).
    pad_h = H_pad - H
    emb_p = jnp.pad(emb, ((0, 0), (0, pad_h)))                                    # (V, H_pad)
    w_p = jnp.pad(params["token_type_w"].T.astype(jnp.float32), ((0, 0), (0, pad_h)))  # (3, H_pad)
    b_p = jnp.pad(params["token_type_b"].astype(jnp.float32).reshape(1, H), ((0, 0), (0, pad_h)))
    g_p = jnp.pad(params["ln_gamma"].astype(jnp.float32).reshape(1, H), ((0, 0), (0, pad_h)))
    be_p = jnp.pad(params["ln_beta"].astype(jnp.float32).reshape(1, H), ((0, 0), (0, pad_h)))

    # Row-pad ids / token_type_ids so every grid step is a full tile.
    ids = jnp.clip(input_ids.reshape(N).astype(jnp.int32), 0, V - 1)
    ids = jnp.pad(ids, (0, n_pad - N))
    tt = token_type_ids.reshape(N, 3).astype(jnp.float32)
    tt = jnp.pad(tt, ((0, n_pad - N), (0, 0)))

    kernel = functools.partial(_embeddings_kernel, eps=eps,
                               tile_rows=tile, hidden=H)

    out = pl.pallas_call(
        kernel,
        out_shape=jax.ShapeDtypeStruct((n_pad, H_pad), out_dtype),
        grid_spec=pltpu.PrefetchScalarGridSpec(
            num_scalar_prefetch=1,                 # input_ids -> SMEM
            grid=grid,
            in_specs=[
                pl.BlockSpec((tile, 3), lambda i, ids: (i, 0)),      # token_type tile
                pl.BlockSpec((3, H_pad), lambda i, ids: (0, 0)),     # Linear W^T
                pl.BlockSpec((1, H_pad), lambda i, ids: (0, 0)),     # Linear bias
                pl.BlockSpec((1, H_pad), lambda i, ids: (0, 0)),     # LN gamma
                pl.BlockSpec((1, H_pad), lambda i, ids: (0, 0)),     # LN beta
                pl.BlockSpec(memory_space=pl.ANY),                   # emb table (HBM)
            ],
            out_specs=pl.BlockSpec((tile, H_pad), lambda i, ids: (i, 0)),
            scratch_shapes=[
                pltpu.VMEM((2 * tile, H_pad), jnp.float32),          # 2-slot gather buffer
                pltpu.SemaphoreType.DMA((2,)),                       # per-slot gather sems
            ]),
        compiler_params=pltpu.CompilerParams(
            # "arbitrary": scratch/semaphore state carries across grid steps
            # (cross-step gather prefetch), so steps must run sequentially.
            dimension_semantics=("arbitrary",),
            vmem_limit_bytes=40 << 20),            # v5e scoped default (16 MiB) is too small
    )(ids, tt, w_p, b_p, g_p, be_p, emb_p)

    return out[:N, :H].reshape(B, S, H).astype(out_dtype)


# --------------------------- pure-JAX reference -------------------------------
def reference(input_ids, token_type_ids, params, eps=1e-5):
    we = jnp.take(params["word_embeddings"], input_ids, axis=0)
    tt = token_type_ids.astype(jnp.float32) @ params["token_type_w"].T \
        + params["token_type_b"]
    x = we + tt
    mean = jnp.mean(x, axis=-1, keepdims=True)
    var = jnp.mean((x - mean) ** 2, axis=-1, keepdims=True)
    xn = (x - mean) / jnp.sqrt(var + eps)
    return xn * params["ln_gamma"] + params["ln_beta"]


if __name__ == "__main__":
    # Config (small, consistent with the module's __init__):
    VOCAB, HIDDEN, EPS, PAD_ID = 50, 32, 1e-5, 1
    B, S = 2, 8

    key = jax.random.PRNGKey(0)
    k_we, k_w, k_b, k_ids, k_tt = jax.random.split(key, 5)

    params = {
        "word_embeddings": jax.random.normal(k_we, (VOCAB, HIDDEN), jnp.float32) * 0.02,
        "token_type_w": jax.random.normal(k_w, (HIDDEN, 3), jnp.float32) * 0.1,  # nn.Linear(3, H).weight
        "token_type_b": jax.random.normal(k_b, (HIDDEN,), jnp.float32) * 0.01,   # nn.Linear(3, H).bias
        "ln_gamma": jnp.ones((HIDDEN,), jnp.float32),
        "ln_beta": jnp.zeros((HIDDEN,), jnp.float32),
    }

    input_ids = jax.random.randint(k_ids, (B, S), 0, VOCAB, dtype=jnp.int32)
    token_type_ids = jax.random.normal(k_tt, (B, S, 3), jnp.float32)

    out = longformer_quake_embeddings(input_ids, token_type_ids, params, eps=EPS)
    out = jax.block_until_ready(out)

    ref = reference(input_ids, token_type_ids, params, eps=EPS)
    assert out.shape == (B, S, HIDDEN)
    assert jnp.allclose(out, ref, atol=1e-5, rtol=1e-5), "mismatch vs reference"

    print("KERNEL_OK")
</pallas_src>

<mosaic_0001>
module attributes {stable_mosaic.version = 11 : i64} {
  func.func @_embeddings_kernel(%arg0: i32, %arg1: memref<16xi32, #tpu.memory_space<smem>>, %arg2: memref<16x3xf32, #tpu.memory_space<vmem>>, %arg3: memref<3x128xf32, #tpu.memory_space<vmem>>, %arg4: memref<1x128xf32, #tpu.memory_space<vmem>>, %arg5: memref<1x128xf32, #tpu.memory_space<vmem>>, %arg6: memref<1x128xf32, #tpu.memory_space<vmem>>, %arg7: memref<50x128xf32, #tpu.memory_space<any>>, %arg8: memref<16x128xf32, #tpu.memory_space<vmem>>, %arg9: memref<32x128xf32, #tpu.memory_space<vmem>>, %arg10: memref<2x!tpu.dma_semaphore, #tpu.memory_space<semaphore_mem>>) attributes {dimension_semantics = [#tpu.dimension_semantics<arbitrary>], iteration_bounds = array<i64: 1>, scalar_prefetch = 1 : i64, scratch_operands = 2 : i64, tpu.core_type = #tpu.core_type<tc>, window_params = [{transform_indices = @transform_0, window_bounds = array<i64: 16, 3>}, {pipeline_mode = #tpu.pipeline_mode<synchronous>, transform_indices = @transform_1, window_bounds = array<i64: 3, 128>}, {pipeline_mode = #tpu.pipeline_mode<synchronous>, transform_indices = @transform_2, window_bounds = array<i64: 1, 128>}, {pipeline_mode = #tpu.pipeline_mode<synchronous>, transform_indices = @transform_3, window_bounds = array<i64: 1, 128>}, {pipeline_mode = #tpu.pipeline_mode<synchronous>, transform_indices = @transform_4, window_bounds = array<i64: 1, 128>}, {}, {transform_indices = @transform_6, window_bounds = array<i64: 16, 128>}]} {
    %c2_i32 = arith.constant 2 : i32
    %0 = arith.remsi %arg0, %c2_i32 : i32
    %c0_i32 = arith.constant 0 : i32
    %1 = arith.cmpi eq, %arg0, %c0_i32 : i32
    %2 = arith.extui %1 : i1 to i32
    %c0_i32_0 = arith.constant 0 : i32
    %3 = arith.cmpi ne, %2, %c0_i32_0 : i32
    scf.if %3 {
      %c0_i32_25 = arith.constant 0 : i32
      %c16_i32_26 = arith.constant 16 : i32
      %60 = arith.addi %c0_i32_25, %c16_i32_26 : i32
      %c1_i32_27 = arith.constant 1 : i32
      scf.for %arg11 = %c0_i32_25 to %60 step %c1_i32_27  : i32 {
        %c0_i32_29 = arith.constant 0 : i32
        %61 = arith.addi %c0_i32_29, %arg11 : i32
        %62 = arith.index_cast %61 : i32 to index
        %63 = memref.load %arg1[%62] : memref<16xi32, #tpu.memory_space<smem>>
        %c0_i32_30 = arith.constant 0 : i32
        %64 = arith.addi %c0_i32_30, %arg11 : i32
        %c0_i32_31 = arith.constant 0 : i32
        %c0_i32_32 = arith.constant 0 : i32
        %65 = tpu.memref_slice %arg7[%63, %c0_i32_32] : memref<50x128xf32, #tpu.memory_space<any>> -> memref<1x128xf32, #tpu.memory_space<any>>
        %c0_i32_33 = arith.constant 0 : i32
        %66 = tpu.memref_slice %arg9[%64, %c0_i32_33] : memref<32x128xf32, #tpu.memory_space<vmem>> -> memref<1x128xf32, #tpu.memory_space<vmem>>
        %67 = tpu.memref_slice %arg10[%c0_i32_31] : memref<2x!tpu.dma_semaphore, #tpu.memory_space<semaphore_mem>> -> memref<1x!tpu.dma_semaphore, #tpu.memory_space<semaphore_mem>>
        %68 = tpu.memref_squeeze %67 : memref<1x!tpu.dma_semaphore, #tpu.memory_space<semaphore_mem>> -> memref<!tpu.dma_semaphore, #tpu.memory_space<semaphore_mem>>
        tpu.enqueue_dma source(%65 : memref<1x128xf32, #tpu.memory_space<any>>) target(%66 : memref<1x128xf32, #tpu.memory_space<vmem>>) target_semaphore(%68 : memref<!tpu.dma_semaphore, #tpu.memory_space<semaphore_mem>>)
      }
      %c16_i32_28 = arith.constant 16 : i32
    } else {
    }
    %c1_i32 = arith.constant 1 : i32
    %4 = arith.addi %arg0, %c1_i32 : i32
    %c1_i32_1 = arith.constant 1 : i32
    %5 = arith.cmpi slt, %4, %c1_i32_1 : i32
    %6 = arith.extui %5 : i1 to i32
    %c0_i32_2 = arith.constant 0 : i32
    %7 = arith.cmpi ne, %6, %c0_i32_2 : i32
    scf.if %7 {
      %c1_i32_25 = arith.constant 1 : i32
      %60 = arith.addi %arg0, %c1_i32_25 : i32
      %c1_i32_26 = arith.constant 1 : i32
      %61 = arith.subi %c1_i32_26, %0 : i32
      %c16_i32_27 = arith.constant 16 : i32
      %62 = arith.muli %60, %c16_i32_27 : i32
      %c16_i32_28 = arith.constant 16 : i32
      %63 = arith.muli %61, %c16_i32_28 : i32
      %c0_i32_29 = arith.constant 0 : i32
      %c16_i32_30 = arith.constant 16 : i32
      %64 = arith.addi %c0_i32_29, %c16_i32_30 : i32
      %c1_i32_31 = arith.constant 1 : i32
      scf.for %arg11 = %c0_i32_29 to %64 step %c1_i32_31  : i32 {
        %65 = arith.addi %62, %arg11 : i32
        %66 = arith.index_cast %65 : i32 to index
        %67 = memref.load %arg1[%66] : memref<16xi32, #tpu.memory_space<smem>>
        %68 = arith.addi %63, %arg11 : i32
        %c0_i32_33 = arith.constant 0 : i32
        %69 = tpu.memref_slice %arg7[%67, %c0_i32_33] : memref<50x128xf32, #tpu.memory_space<any>> -> memref<1x128xf32, #tpu.memory_space<any>>
        %c0_i32_34 = arith.constant 0 : i32
        %70 = tpu.memref_slice %arg9[%68, %c0_i32_34] : memref<32x128xf32, #tpu.memory_space<vmem>> -> memref<1x128xf32, #tpu.memory_space<vmem>>
        %71 = tpu.memref_slice %arg10[%61] : memref<2x!tpu.dma_semaphore, #tpu.memory_space<semaphore_mem>> -> memref<1x!tpu.dma_semaphore, #tpu.memory_space<semaphore_mem>>
        %72 = tpu.memref_squeeze %71 : memref<1x!tpu.dma_semaphore, #tpu.memory_space<semaphore_mem>> -> memref<!tpu.dma_semaphore, #tpu.memory_space<semaphore_mem>>
        tpu.enqueue_dma source(%69 : memref<1x128xf32, #tpu.memory_space<any>>) target(%70 : memref<1x128xf32, #tpu.memory_space<vmem>>) target_semaphore(%72 : memref<!tpu.dma_semaphore, #tpu.memory_space<semaphore_mem>>)
      }
      %c16_i32_32 = arith.constant 16 : i32
    } else {
    }
    %c0 = arith.constant 0 : index
    %c0_3 = arith.constant 0 : index
    %8 = vector.load %arg2[%c0, %c0_3] : memref<16x3xf32, #tpu.memory_space<vmem>>, vector<16x3xf32>
    %9 = vector.extract_strided_slice %8 {offsets = [0, 0], sizes = [16, 1], strides = [1, 1]} : vector<16x3xf32> to vector<16x1xf32>
    %c0_4 = arith.constant 0 : index
    %c0_5 = arith.constant 0 : index
    %10 = vector.load %arg3[%c0_4, %c0_5] : memref<3x128xf32, #tpu.memory_space<vmem>>, vector<1x128xf32>
    %11 = vector.broadcast %9 : vector<16x1xf32> to vector<16x128xf32>
    %12 = vector.broadcast %10 : vector<1x128xf32> to vector<16x128xf32>
    %13 = arith.mulf %11, %12 : vector<16x128xf32>
    %14 = vector.extract_strided_slice %8 {offsets = [0, 1], sizes = [16, 1], strides = [1, 1]} : vector<16x3xf32> to vector<16x1xf32>
    %c1 = arith.constant 1 : index
    %c0_6 = arith.constant 0 : index
    %15 = vector.load %arg3[%c1, %c0_6] : memref<3x128xf32, #tpu.memory_space<vmem>>, vector<1x128xf32>
    %16 = vector.broadcast %14 : vector<16x1xf32> to vector<16x128xf32>
    %17 = vector.broadcast %15 : vector<1x128xf32> to vector<16x128xf32>
    %18 = arith.mulf %16, %17 : vector<16x128xf32>
    %19 = arith.addf %13, %18 : vector<16x128xf32>
    %20 = vector.extract_strided_slice %8 {offsets = [0, 2], sizes = [16, 1], strides = [1, 1]} : vector<16x3xf32> to vector<16x1xf32>
    %c2 = arith.constant 2 : index
    %c0_7 = arith.constant 0 : index
    %21 = vector.load %arg3[%c2, %c0_7] : memref<3x128xf32, #tpu.memory_space<vmem>>, vector<1x128xf32>
    %22 = vector.broadcast %20 : vector<16x1xf32> to vector<16x128xf32>
    %23 = vector.broadcast %21 : vector<1x128xf32> to vector<16x128xf32>
    %24 = arith.mulf %22, %23 : vector<16x128xf32>
    %25 = arith.addf %19, %24 : vector<16x128xf32>
    %c0_8 = arith.constant 0 : index
    %c0_9 = arith.constant 0 : index
    %26 = vector.load %arg4[%c0_8, %c0_9] : memref<1x128xf32, #tpu.memory_space<vmem>>, vector<1x128xf32>
    %27 = vector.broadcast %26 : vector<1x128xf32> to vector<16x128xf32>
    %28 = arith.addf %25, %27 : vector<16x128xf32>
    %c0_i32_10 = arith.constant 0 : i32
    %c16_i32 = arith.constant 16 : i32
    %29 = arith.addi %c0_i32_10, %c16_i32 : i32
    %c1_i32_11 = arith.constant 1 : i32
    scf.for %arg11 = %c0_i32_10 to %29 step %c1_i32_11  : i32 {
      %c16_i32_25 = arith.constant 16 : i32
      %60 = arith.muli %0, %c16_i32_25 : i32
      %61 = arith.addi %60, %arg11 : i32
      %c0_i32_26 = arith.constant 0 : i32
      %c0_i32_27 = arith.constant 0 : i32
      %62 = tpu.memref_slice %arg7[%c0_i32_26, %c0_i32_27] : memref<50x128xf32, #tpu.memory_space<any>> -> memref<1x128xf32, #tpu.memory_space<any>>
      %c0_i32_28 = arith.constant 0 : i32
      %63 = tpu.memref_slice %arg9[%61, %c0_i32_28] : memref<32x128xf32, #tpu.memory_space<vmem>> -> memref<1x128xf32, #tpu.memory_space<vmem>>
      %64 = tpu.memref_slice %arg10[%0] : memref<2x!tpu.dma_semaphore, #tpu.memory_space<semaphore_mem>> -> memref<1x!tpu.dma_semaphore, #tpu.memory_space<semaphore_mem>>
      %65 = tpu.memref_squeeze %64 : memref<1x!tpu.dma_semaphore, #tpu.memory_space<semaphore_mem>> -> memref<!tpu.dma_semaphore, #tpu.memory_space<semaphore_mem>>
      tpu.wait_dma2 semaphore(%65 : memref<!tpu.dma_semaphore, #tpu.memory_space<semaphore_mem>>) src(%62 : memref<1x128xf32, #tpu.memory_space<any>>) dst(%63 : memref<1x128xf32, #tpu.memory_space<vmem>>)
    }
    %c16_i32_12 = arith.constant 16 : i32
    %c16_i32_13 = arith.constant 16 : i32
    %30 = arith.muli %0, %c16_i32_13 : i32
    %31 = tpu.assume_multiple %30, 8 : i32
    %32 = arith.index_cast %31 : i32 to index
    %c0_14 = arith.constant 0 : index
    %33 = vector.load %arg9[%32, %c0_14] : memref<32x128xf32, #tpu.memory_space<vmem>>, vector<16x128xf32>
    %34 = arith.addf %33, %28 : vector<16x128xf32>
    %cst = arith.constant dense<0.000000e+00> : vector<16xf32>
    %35 = vector.multi_reduction <add>, %34, %cst [1] : vector<16x128xf32> to vector<16xf32>
    %36 = vector.shape_cast %35 : vector<16xf32> to vector<16x1xf32>
    %cst_15 = arith.constant 3.125000e-02 : f32
    %37 = vector.broadcast %cst_15 : f32 to vector<16x1xf32>
    %38 = arith.mulf %36, %37 : vector<16x1xf32>
    %39 = arith.mulf %34, %34 : vector<16x128xf32>
    %cst_16 = arith.constant dense<0.000000e+00> : vector<16xf32>
    %40 = vector.multi_reduction <add>, %39, %cst_16 [1] : vector<16x128xf32> to vector<16xf32>
    %41 = vector.shape_cast %40 : vector<16xf32> to vector<16x1xf32>
    %cst_17 = arith.constant 3.125000e-02 : f32
    %42 = vector.broadcast %cst_17 : f32 to vector<16x1xf32>
    %43 = arith.mulf %41, %42 : vector<16x1xf32>
    %44 = arith.mulf %38, %38 : vector<16x1xf32>
    %45 = arith.subf %43, %44 : vector<16x1xf32>
    %46 = vector.broadcast %38 : vector<16x1xf32> to vector<16x128xf32>
    %47 = arith.subf %34, %46 : vector<16x128xf32>
    %cst_18 = arith.constant 9.99999974E-6 : f32
    %48 = vector.broadcast %cst_18 : f32 to vector<16x1xf32>
    %49 = arith.addf %45, %48 : vector<16x1xf32>
    %50 = math.rsqrt %49 : vector<16x1xf32>
    %51 = vector.broadcast %50 : vector<16x1xf32> to vector<16x128xf32>
    %52 = arith.mulf %47, %51 : vector<16x128xf32>
    %c0_19 = arith.constant 0 : index
    %c0_20 = arith.constant 0 : index
    %53 = vector.load %arg5[%c0_19, %c0_20] : memref<1x128xf32, #tpu.memory_space<vmem>>, vector<1x128xf32>
    %54 = vector.broadcast %53 : vector<1x128xf32> to vector<16x128xf32>
    %55 = arith.mulf %52, %54 : vector<16x128xf32>
    %c0_21 = arith.constant 0 : index
    %c0_22 = arith.constant 0 : index
    %56 = vector.load %arg6[%c0_21, %c0_22] : memref<1x128xf32, #tpu.memory_space<vmem>>, vector<1x128xf32>
    %57 = vector.broadcast %56 : vector<1x128xf32> to vector<16x128xf32>
    %58 = arith.addf %55, %57 : vector<16x128xf32>
    %c0_23 = arith.constant 0 : index
    %c0_24 = arith.constant 0 : index
    %59 = vector.load %arg8[%c0_23, %c0_24] : memref<16x128xf32, #tpu.memory_space<vmem>>, vector<16x128xf32>
    tpu.vector_store %arg8[%c0_23, %c0_24], %58 {strides = array<i32>} : memref<16x128xf32, #tpu.memory_space<vmem>>, vector<16x128xf32>,
    return
  }
  func.func @transform_0(%arg0: i32, %arg1: memref<16xi32, #tpu.memory_space<smem>>) -> (i32, i32) {
    %c0_i32 = arith.constant 0 : i32
    %c0_i32_0 = arith.constant 0 : i32
    return %arg0, %c0_i32 : i32, i32
  }
  func.func @transform_1(%arg0: i32, %arg1: memref<16xi32, #tpu.memory_space<smem>>) -> (i32, i32) {
    %c0_i32 = arith.constant 0 : i32
    %c0_i32_0 = arith.constant 0 : i32
    %c0_i32_1 = arith.constant 0 : i32
    return %c0_i32, %c0_i32_0 : i32, i32
  }
  func.func @transform_2(%arg0: i32, %arg1: memref<16xi32, #tpu.memory_space<smem>>) -> (i32, i32) {
    %c0_i32 = arith.constant 0 : i32
    %c0_i32_0 = arith.constant 0 : i32
    %c0_i32_1 = arith.constant 0 : i32
    return %c0_i32, %c0_i32_0 : i32, i32
  }
  func.func @transform_3(%arg0: i32, %arg1: memref<16xi32, #tpu.memory_space<smem>>) -> (i32, i32) {
    %c0_i32 = arith.constant 0 : i32
    %c0_i32_0 = arith.constant 0 : i32
    %c0_i32_1 = arith.constant 0 : i32
    return %c0_i32, %c0_i32_0 : i32, i32
  }
  func.func @transform_4(%arg0: i32, %arg1: memref<16xi32, #tpu.memory_space<smem>>) -> (i32, i32) {
    %c0_i32 = arith.constant 0 : i32
    %c0_i32_0 = arith.constant 0 : i32
    %c0_i32_1 = arith.constant 0 : i32
    return %c0_i32, %c0_i32_0 : i32, i32
  }
  func.func @transform_6(%arg0: i32, %arg1: memref<16xi32, #tpu.memory_space<smem>>) -> (i32, i32) {
    %c0_i32 = arith.constant 0 : i32
    %c0_i32_0 = arith.constant 0 : i32
    return %arg0, %c0_i32 : i32, i32
  }
}

</mosaic_0001>

<bundles_post_ra>
// kernel: tpu_custom_call.1
= control target key start
LH: loop header
LB: loop body
LE: loop exit
PB: predicated region body
PF: predicated region fallthrough
CT: control target
= control target key end

     0   :  { %s494_s0 = inlined_call_operand.vmem [shape: s32[16], index: 0, kind: input, shape index: {}]   ;;  %s495_s1 = inlined_call_operand.vmem [shape: f32[16,3], index: 1, kind: input, shape index: {}]   ;;  %s496_s2 = inlined_call_operand.vmem [shape: f32[3,128], index: 2, kind: input, shape index: {}]   ;;  %s497_s3 = inlined_call_operand.vmem [shape: f32[1,128], index: 3, kind: input, shape index: {}]   ;;  %s498_s4 = inlined_call_operand.vmem [shape: f32[1,128], index: 4, kind: input, shape index: {}]   ;;  %s499_s5 = inlined_call_operand.vmem [shape: f32[1,128], index: 5, kind: input, shape index: {}]   ;;  %s500_s6 = inlined_call_operand.hbm [shape: f32[50,128], index: 6, kind: input, shape index: {}]   ;;  %s501_s7 = inlined_call_operand.hbm [shape: f32[16,128], index: 7, kind: output, shape index: {}]  }
   0x1   :  { %s12_s26 = sshll.u32 %s494_s0, 4  ;;  %s13_s26 = int_to_ptr.vmem [resolvable:$true] %s12_s26 }
   0x2   :  { %s308_s27 = scalar_lea.vmem %s13_s26, 16  ;;  %p313_p1 = scmp.lt.s32.totalorder %s13_s26, %s13_s26 }
   0x3   :  { %p309_p0 = scmp.ne.s32.totalorder %s13_s26, %s308_s27  ;;  %p314_p2 = scmp.lt.s32.totalorder %s308_s27, %s308_s27 }
   0x5   :  { %p315_p3 = por %p314_p2, %p313_p1 }
   0x7   :  { %p316_p4 = pnand %p315_p3, %p309_p0 }
   0x9   :  { %319 = shalt.err (!%p316_p4)  }
   0xa   :  { %s388_s28 = smov [#allocation5]  }
   0xb   :  { %15 = dma.vmem_to_smem %s13_s26, 16, %s388_s28, [#allocation4] }
   0xc   :  { %374 = dma.done.wait [#allocation4], 16 }
   0xd   :  { %375 = vsyncadd [#allocation4], 4294967280 }
   0xe   :  { %17 = sfence }
   0xf   :  { %18 = vsyncpa [#allocation7], 0  ;;  %s439_s29 = smov 0  }
  0x10 LB: > { %s41_s0 = sld [smem:[#allocation5 + %s382_s29]]  ;;  %s44_s30 = scalar_lea.vmem [#allocation2], %s382_s29  ;;  %s382_s29 = sphi %s439_s29, %s40_s29  }
  0x11   : > { %s52_s8 = sshll.u32 %s44_s30, 4  ;;  %s322_s16 = scalar_lea.hbm %s500_s6, 896  ;;  %s53_s8 = int_to_ptr.vmem [resolvable:$true] %s52_s8 }
  0x16   : > { %s264_s9 = sshll.u32 %s41_s0, 4 }
  0x17   : > { %s43_s12 = scalar_lea.hbm %s500_s6, %s264_s9 }
  0x18   : > { %s320_s13 = scalar_lea.hbm %s43_s12, 16  ;;  %p323_p6 = scmp.lt.u32.totalorder %s43_s12, %s500_s6 }
  0x19   : > { %p321_p5 = scmp.ne.s32.totalorder %s43_s12, %s320_s13  ;;  %p324_p7 = scmp.lt.u32.totalorder %s322_s16, %s320_s13 }
  0x1a   : > { %p326_p9 = scmp.lt.u32.totalorder %s320_s13, %s43_s12 }
  0x1b   : > { %p325_p8 = por %p324_p7, %p323_p6 }
  0x1d   : > { %p327_p10 = por %p326_p9, %p325_p8 }
  0x1f   : > { %p328_p11 = pnand %p327_p10, %p321_p5 }
  0x21   : > { %331 = shalt.err (!%p328_p11)  }
  0x22   : > { %s332_s19 = scalar_lea.vmem %s53_s8, 16  ;;  %s389_s20 = smov [#allocation2]  }
  0x23   : > { %p333_p12 = scmp.ne.s32.totalorder %s53_s8, %s332_s19  ;;  %s334_s21 = sshll.u32 %s389_s20, 4  ;;  %s335_s21 = int_to_ptr.vmem [resolvable:$false] %s334_s21 }
  0x24   : > { %s336_s22 = scalar_lea.vmem %s335_s21, 512  ;;  %p337_p13 = scmp.lt.s32.totalorder %s53_s8, %s335_s21 }
  0x25   : > { %p338_p0 = scmp.lt.s32.totalorder %s336_s22, %s332_s19 }
  0x27   : > { %p339_p1 = por %p338_p0, %p337_p13 }
  0x29   : > { %p340_p2 = pnand %p339_p1, %p333_p12 }
  0x2b   : > { %343 = shalt.err (!%p340_p2)  }
  0x2c   : > { %55 = dma.hbm_to_vmem [thread:$0]  %s43_s12, 16, %s53_s8, [#allocation3] }
  0x2d   : > { %s40_s29 = sadd.s32 1, %s382_s29  }
  0x2e   : > { %p37_p3 = scmp.ge.s32.totalorder %s40_s29, 16  }
  0x2f   :  { %v88_v0 = vld [vmem:[%s495_s1] sm:$0xff] (%p37_p3)  ;;  %v390_v1 = vmov (%p37_p3), 1   ;;  %v391_v2 = vmov (%p37_p3), 0   ;;  %v89_v3 = vld [vmem:[%s495_s1 + $0x8] sm:$0xff] (%p37_p3)  ;;  %v392_v4 = vmov (%p37_p3), 2   ;;  %s384_s9 = smov (%p37_p3), 0  }
  0x30   :  { %39 = sbr.rel (!%p37_p3) target bundleno = 16 (0x10), region = 84  ;;  %301 = vset.pattern.permute.xlu1 (%p37_p3), %v390_v1  ;;  %300 = vset.pattern.permute.xlu0 (%p37_p3), %v391_v2  ;;  %v268_v7 = vld [vmem:[%s496_s2 + $0x1] ss:$0 sm:$0xff] (%p37_p3)  ;;  %v267_v8 = vld [vmem:[%s496_s2] ss:$0 sm:$0xff] (%p37_p3) }
  0x31   :  { %109 = vperm.xlu1 (%p37_p3), %301, %v88_v0   ;;  %93 = vperm.xlu0 (%p37_p3), %300, %v88_v0   ;;  %v269_v15 = vld [vmem:[%s496_s2 + $0x2] ss:$0 sm:$0xff] (%p37_p3)  ;;  %v270_v22 = vld [vmem:[%s497_s3] ss:$0 sm:$0xff] (%p37_p3) }
  0x35   :  { %113 = vperm.xlu1 (%p37_p3), %301, %v89_v3   ;;  %98 = vperm.xlu0 (%p37_p3), %300, %v89_v3  }
  0x39   :  { %303 = vset.pattern.permute.xlu1 %v392_v4  ;;  %302 = vset.pattern.permute.xlu0 %v392_v4 }
  0x3a   :  { %130 = vperm.xlu1 %303, %v89_v3   ;;  %126 = vperm.xlu0 %302, %v88_v0  }
  0xb0   :  { %v110_v5 = vpop.permute.xlu1 %109  ;;  %v94_v6 = vpop.permute.xlu0 %93 }
  0xb1   :  { %v120_v11 = vmul.f32 %v268_v7, %v110_v5  ;;  %v105_v12 = vmul.f32 %v267_v8, %v94_v6 }
  0xb3   :  { %v122_v18 = vadd.f32 %v120_v11, %v105_v12 }
  0xb4   :  { %v114_v9 = vpop.permute.xlu1 %113  ;;  %v99_v10 = vpop.permute.xlu0 %98 }
  0xb5   :  { %v121_v13 = vmul.f32 %v268_v7, %v114_v9  ;;  %v106_v14 = vmul.f32 %v267_v8, %v99_v10 }
  0xb7   :  { %v123_v19 = vadd.f32 %v121_v13, %v106_v14 }
  0xb9   :  { %v131_v16 = vpop.permute.xlu1 %130  ;;  %v127_v17 = vpop.permute.xlu0 %126 }
  0xba   :  { %v138_v20 = vmul.f32 %v269_v15, %v131_v16  ;;  %v137_v21 = vmul.f32 %v269_v15, %v127_v17 }
  0xbc   :  { %v140_v23 = vadd.f32 %v138_v20, %v123_v19  ;;  %v139_v24 = vadd.f32 %v137_v21, %v122_v18 }
  0xbe   :  { %v149_v25 = vadd.f32 %v270_v22, %v140_v23  ;;  %v148_v26 = vadd.f32 %v270_v22, %v139_v24 }
  0xbf LB: > { %376 = dma.done.wait [#allocation3], 16  ;;  %s386_s9 = sphi %s384_s9, %s155_s9  }
  0xc0   : > { %377 = vsyncadd [#allocation3], 4294967280  ;;  %s155_s9 = sadd.s32 1, %s386_s9  }
  0xc1   : > { %p152_p4 = scmp.ge.s32.totalorder %s155_s9, 16  }
  0xc2   :  { %v161_v27 = vld [vmem:[#allocation2] sm:$0xff] (%p152_p4)  ;;  %v162_v28 = vld [vmem:[#allocation2 + $0x8] sm:$0xff] (%p152_p4)  ;;  %s393_s12 = smov (%p152_p4), [#allocation6]  }
  0xc3   :  { %154 = sbr.rel (!%p152_p4) target bundleno = 191 (0xbf), region = 106  ;;  %v163_v29 = vadd.f32 (%p152_p4), %v161_v27, %v148_v26  ;;  %v164_v30 = vadd.f32 (%p152_p4), %v162_v28, %v149_v25  ;;  %v271_v49 = vld [vmem:[%s498_s4] ss:$0 sm:$0xff] (%p152_p4)  ;;  %s216_s13 = sshll.u32 (%p152_p4), %s393_s12, 4  ;;  %s217_s13 = int_to_ptr.vmem [resolvable:$true] %s216_s13 }
  0xc4   :  { %v272_v51 = vld [vmem:[%s499_s5] ss:$0 sm:$0xff] (%p152_p4)  ;;  %s344_s14 = scalar_lea.vmem (%p152_p4), %s217_s13, 256  ;;  %p349_p6 = scmp.lt.s32.totalorder (%p152_p4), %s217_s13, %s217_s13 }
  0xc5   :  { %165 = vadd.xlane.f32.xlu0 (%p152_p4), %v163_v29  ;;  %v171_v31 = vmul.f32 (%p152_p4), %v163_v29, %v163_v29  ;;  %v172_v32 = vmul.f32 (%p152_p4), %v164_v30, %v164_v30  ;;  %p345_p5 = scmp.ne.s32.totalorder (%p152_p4), %s217_s13, %s344_s14  ;;  %p350_p7 = scmp.lt.s32.totalorder (%p152_p4), %s344_s14, %s344_s14 }
  0xc7   :  { %173 = vadd.xlane.f32.xlu1 (%p152_p4), %v171_v31  ;;  %p351_p8 = por (%p152_p4), %p350_p7, %p349_p6 }
  0xc9   :  { %167 = vadd.xlane.f32.xlu0 (%p152_p4), %v164_v30  ;;  %p352_p9 = pnand (%p152_p4), %p351_p8, %p345_p5 }
  0xcb   :  { %175 = vadd.xlane.f32.xlu1 %v172_v32 }
 0x152   :  { %v166_v33 = vpop.xlane.xlu0 %165 }
 0x153   :  { %v169_v34 = vmul.f32 0.03125, %v166_v33 }
 0x154   :  { %v174_v35 = vpop.xlane.xlu1 %173 }
 0x155   :  { %v179_v36 = vmul.f32 %v169_v34, %v169_v34  ;;  %v177_v37 = vmul.f32 0.03125, %v174_v35  ;;  %v183_v47 = vsub.f32 %v163_v29, %v169_v34 }
 0x156   :  { %v168_v38 = vpop.xlane.xlu0 %167 }
 0x157   :  { %v181_v39 = vsub.f32 %v177_v37, %v179_v36  ;;  %v170_v40 = vmul.f32 0.03125, %v168_v38 }
 0x158   :  { %v176_v41 = vpop.xlane.xlu1 %175 }
 0x159   :  { %v185_v42 = vadd.f32 1e-05, %v181_v39  ;;  %v180_v43 = vmul.f32 %v170_v40, %v170_v40  ;;  %v178_v44 = vmul.f32 0.03125, %v176_v41  ;;  %v184_v52 = vsub.f32 %v164_v30, %v170_v40 }
 0x15b   :  { %304 = vrsqrt.f32 %v185_v42  ;;  %v182_v45 = vsub.f32 %v178_v44, %v180_v43 }
 0x15d   :  { %v186_v46 = vadd.f32 1e-05, %v182_v45 }
 0x15f   :  { %306 = vrsqrt.f32 %v186_v46 }
 0x165   :  { %v305_v48 = vpop.eup %304 }
 0x166   :  { %v189_v50 = vmul.f32 %v305_v48, %v183_v47 }
 0x168   :  { %v198_v53 = vmul.f32 %v271_v49, %v189_v50 }
 0x169   :  { %v307_v54 = vpop.eup %306 }
 0x16a   :  { %v190_v55 = vmul.f32 %v307_v54, %v184_v52  ;;  %v207_v56 = vadd.f32 %v272_v51, %v198_v53 }
 0x16c   :  { %v199_v57 = vmul.f32 %v271_v49, %v190_v55  ;;  %209 = vst [vmem:[#allocation6] sm:$0xff] %v207_v56 }
 0x16e   :  { %v208_v58 = vadd.f32 %v272_v51, %v199_v57 }
 0x170   :  { %210 = vst [vmem:[#allocation6 + $0x8] sm:$0xff] %v208_v58 }
 0x171   :  { %355 = shalt.err (!%p352_p9)
}
 0x172   :  { %s356_s15 = scalar_lea.hbm %s501_s7, 256 }
 0x173   :  { %p357_p10 = scmp.ne.s32.totalorder %s501_s7, %s356_s15  ;;  %p360_p11 = scmp.lt.u32.totalorder %s356_s15, %s501_s7 }
 0x175   :  { %p362_p12 = pnand %p360_p11, %p357_p10 }
 0x177   :  { %365 = shalt.err (!%p362_p12)
}
 0x178   :  { %s394_s20 = smov 128   ;;  %s395_s21 = smov 8  }
 0x179   :  { %222 = dma.vmem_to_hbm [thread:$0]  %s217_s13, 256, %s501_s7, [#allocation7], %s394_s20, %s394_s20, %s395_s21  }
 0x17a   :  { %378 = dma.done.wait [#allocation7], 256  }
 0x17b   :  { %379 = vsyncadd [#allocation7], 4294967040 }
 0x17c   :  { %226 = vsyncpa [#allocation7], 1 }
 0x17d   :  { %227 = vsyncmov [#allocation3] }
 0x180   :  { %s228_s24 = vpop.sfrf %227 }
 0x181   :  { %p273_p13 = scmp.ne.s32.totalorder %s228_s24, 0 }
 0x183   :  { %232 = shalt.err (%p273_p13)  }
 0x184   :  { %234 = vsyncmov [#allocation3 + $0x1] }
 0x187   :  { %s235_s25 = vpop.sfrf %234 }
 0x188   :  { %p274_p0 = scmp.ne.s32.totalorder %s235_s25, 0 }
 0x18a   :  { %239 = shalt.err (%p274_p0)  }

</bundles_post_ra>
